<compile_context>
chip_gen: v5e
topology: v5e:2x2
jax: 0.10.0
libtpu: 0.0.40
codegen_flags: <defaults>
</compile_context>

<pallas_src>
import jax
import jax.numpy as jnp
from jax.experimental import pallas as pl
from jax.experimental.pallas import tpu as pltpu


def attention_kernel(x_ref, w1_ref, b1_ref, w2_ref, out_ref, attn_ref):
    TB, N, D = x_ref.shape
    A = w1_ref.shape[1]

    x = x_ref[...]                                    # (TB, N, D)

    # --- Linear(D, A) + Tanh: one tall MXU matmul over the whole tile -----
    x2d = x.reshape(TB * N, D)                        # merge leading dims
    h = jnp.tanh(
        jnp.dot(x2d, w1_ref[...], preferred_element_type=jnp.float32)
        + b1_ref[...]                                 # (1, A) broadcast
    )                                                 # (TB*N, A)

    # --- Linear(A, 1): VPU multiply + lane reduction (skip the MXU) -------
    # w2 is passed as a (1, A) row; the output bias b2 is a softmax no-op.
    h3 = h.reshape(TB, N, A)
    s = jnp.sum(h3 * w2_ref[...].reshape(1, 1, A), axis=-1)   # (TB, N) scores

    # --- Softmax over the sequence axis, per batch row ---------------------
    m = jnp.max(s, axis=1, keepdims=True)             # (TB, 1)
    e = jnp.exp(s - m)
    denom = jnp.sum(e, axis=1, keepdims=True)         # (TB, 1)
    w = e * pl.reciprocal(denom, approx=True)         # (TB, N)

    # --- Outputs ------------------------------------------------------------
    out_ref[...] = (x * w.reshape(TB, N, 1)).astype(out_ref.dtype)   # (TB, N, D)
    attn_ref[...] = w.reshape(TB, 1, N).astype(attn_ref.dtype)       # lane-dense


def _pick_batch_tile(B, N, D, A, vmem_budget_bytes=16 << 20):
    """Largest divisor of B fitting a conservative VMEM budget (safe on v7x's
    smaller VMEM); prefer >= 2 grid steps so both v7x TensorCores get work
    (costs nothing on v5e/v6e)."""
    # per-batch f32 bytes: double-buffered in/out tiles + h intermediate + attn
    per_tb = (2 * 2 * N * D + N * A + 2 * N) * 4
    cap = max(1, vmem_budget_bytes // max(per_tb, 1))
    divisors = [t for t in range(1, B + 1) if B % t == 0 and t <= cap]
    multi_step = [t for t in divisors if B // t >= 2]
    return max(multi_step) if multi_step else max(divisors)


def attention_layer(features, w1, b1, w2, b2=None):
    """features: (B, N, D) f32. Returns (attended (B, N, D), weights (B, N, 1)).

    b2 is accepted for API parity with nn.Linear(attention_dim, 1) but unused:
    softmax is invariant to adding a scalar to every score of a row.
    """
    del b2
    B, N, D = features.shape
    A = w1.shape[1]
    b1_2d = b1.reshape(1, A)
    w2_row = w2.reshape(1, A)          # (A, 1) -> (1, A) row for the VPU reduction
    TB = _pick_batch_tile(B, N, D, A)

    cost = pl.CostEstimate(
        flops=2 * B * N * D * A + 3 * B * N * A + 6 * B * N * D,
        transcendentals=B * N * A + B * N,
        bytes_accessed=4 * (2 * B * N * D + B * N + D * A + 2 * A),
    )

    out_shapes = (
        jax.ShapeDtypeStruct((B, N, D), features.dtype),
        jax.ShapeDtypeStruct((B, 1, N), features.dtype),   # lane-dense weights
    )

    attended, attn_b1n = pl.pallas_call(
        attention_kernel,
        out_shape=out_shapes,
        grid_spec=pltpu.PrefetchScalarGridSpec(
            num_scalar_prefetch=0,
            grid=(B // TB,),
            in_specs=[
                pl.BlockSpec((TB, N, D), lambda b: (b, 0, 0)),   # features tile
                pl.BlockSpec((D, A), lambda b: (0, 0)),          # W1 (replicated)
                pl.BlockSpec((1, A), lambda b: (0, 0)),          # b1
                pl.BlockSpec((1, A), lambda b: (0, 0)),          # W2 row
            ],
            out_specs=[
                pl.BlockSpec((TB, N, D), lambda b: (b, 0, 0)),
                pl.BlockSpec((TB, 1, N), lambda b: (b, 0, 0)),
            ],
        ),
        compiler_params=pltpu.CompilerParams(
            dimension_semantics=("parallel",),
        ),
        cost_estimate=cost,
    )(features, w1, b1_2d, w2_row)

    # (B, 1, N) -> (B, N, 1): pure reshape (middle dim is 1), done outside the kernel.
    return attended, attn_b1n.reshape(B, N, 1)


def reference(features, w1, b1, w2, b2):
    h = jnp.tanh(features @ w1 + b1)            # (B, N, A)
    s = h @ w2 + b2                             # (B, N, 1)
    w = jax.nn.softmax(s, axis=1)               # softmax over the sequence dim
    return features * w, w


if __name__ == "__main__":
    # Small shapes consistent with the module's forward: (B, N, D) features,
    # attention_dim A.
    B, N, D, A = 4, 8, 32, 64   # batch, seq, input_dim, attention_dim

    key = jax.random.PRNGKey(0)
    k_x, k_w1, k_b1, k_w2, k_b2 = jax.random.split(key, 5)

    features = jax.random.normal(k_x, (B, N, D), dtype=jnp.float32)
    # Deterministic param init (uniform like torch's default Linear init scale).
    w1 = jax.random.uniform(k_w1, (D, A), jnp.float32, -1.0, 1.0) / jnp.sqrt(D)
    b1 = jax.random.uniform(k_b1, (A,), jnp.float32, -1.0, 1.0) / jnp.sqrt(D)
    w2 = jax.random.uniform(k_w2, (A, 1), jnp.float32, -1.0, 1.0) / jnp.sqrt(A)
    b2 = jax.random.uniform(k_b2, (1,), jnp.float32, -1.0, 1.0) / jnp.sqrt(A)

    attended, attn_w = attention_layer(features, w1, b1, w2, b2)
    jax.block_until_ready((attended, attn_w))

    ref_attended, ref_w = reference(features, w1, b1, w2, b2)
    # approx reciprocal (EUP vrcp) adds ~1e-4-level relative error in the softmax
    # denominator; tolerances account for that while still catching real bugs.
    assert jnp.allclose(attended, ref_attended, atol=2e-4, rtol=2e-3), "attended mismatch"
    assert jnp.allclose(attn_w, ref_w, atol=2e-4, rtol=2e-3), "weights mismatch"

    print("KERNEL_OK")
</pallas_src>

<mosaic_0001>
module attributes {stable_mosaic.version = 11 : i64} {
  func.func @attention_kernel(%arg0: i32, %arg1: memref<2x8x32xf32, #tpu.memory_space<vmem>>, %arg2: memref<32x64xf32, #tpu.memory_space<vmem>>, %arg3: memref<1x64xf32, #tpu.memory_space<vmem>>, %arg4: memref<1x64xf32, #tpu.memory_space<vmem>>, %arg5: memref<2x8x32xf32, #tpu.memory_space<vmem>>, %arg6: memref<2x1x8xf32, #tpu.memory_space<vmem>>) attributes {dimension_semantics = [#tpu.dimension_semantics<parallel>], iteration_bounds = array<i64: 2>, scalar_prefetch = 0 : i64, scratch_operands = 0 : i64, tpu.core_type = #tpu.core_type<tc>, window_params = [{transform_indices = @transform_0, window_bounds = array<i64: 2, 8, 32>}, {pipeline_mode = #tpu.pipeline_mode<synchronous>, transform_indices = @transform_1, window_bounds = array<i64: 32, 64>}, {pipeline_mode = #tpu.pipeline_mode<synchronous>, transform_indices = @transform_2, window_bounds = array<i64: 1, 64>}, {pipeline_mode = #tpu.pipeline_mode<synchronous>, transform_indices = @transform_3, window_bounds = array<i64: 1, 64>}, {transform_indices = @transform_4, window_bounds = array<i64: 2, 8, 32>}, {transform_indices = @transform_5, window_bounds = array<i64: 2, 1, 8>}]} {
    %c0 = arith.constant 0 : index
    %c0_0 = arith.constant 0 : index
    %c0_1 = arith.constant 0 : index
    %0 = vector.load %arg1[%c0, %c0_0, %c0_1] : memref<2x8x32xf32, #tpu.memory_space<vmem>>, vector<2x8x32xf32>
    %1 = vector.shape_cast %0 : vector<2x8x32xf32> to vector<16x32xf32>
    %c0_2 = arith.constant 0 : index
    %c0_3 = arith.constant 0 : index
    %2 = vector.load %arg2[%c0_2, %c0_3] : memref<32x64xf32, #tpu.memory_space<vmem>>, vector<32x64xf32>
    %cst = arith.constant dense<0.000000e+00> : vector<16x64xf32>
    %3 = tpu.matmul %1, %2, %cst {dimension_numbers = #tpu.dot_dimension_numbers<[1], [0], [0], [1], [0, 0, 1, 1], [], []>} : vector<16x32xf32>, vector<32x64xf32>, vector<16x64xf32> -> vector<16x64xf32>
    %c0_4 = arith.constant 0 : index
    %c0_5 = arith.constant 0 : index
    %4 = vector.load %arg3[%c0_4, %c0_5] : memref<1x64xf32, #tpu.memory_space<vmem>>, vector<1x64xf32>
    %5 = vector.broadcast %4 : vector<1x64xf32> to vector<16x64xf32>
    %6 = arith.addf %3, %5 : vector<16x64xf32>
    %7 = math.tanh %6 : vector<16x64xf32>
    %8 = vector.shape_cast %7 : vector<16x64xf32> to vector<2x8x64xf32>
    %c0_6 = arith.constant 0 : index
    %c0_7 = arith.constant 0 : index
    %9 = vector.load %arg4[%c0_6, %c0_7] : memref<1x64xf32, #tpu.memory_space<vmem>>, vector<1x64xf32>
    %10 = vector.shape_cast %9 : vector<1x64xf32> to vector<1x1x64xf32>
    %11 = vector.broadcast %10 : vector<1x1x64xf32> to vector<2x8x64xf32>
    %12 = arith.mulf %8, %11 : vector<2x8x64xf32>
    %cst_8 = arith.constant dense<0.000000e+00> : vector<2x8xf32>
    %13 = vector.multi_reduction <add>, %12, %cst_8 [2] : vector<2x8x64xf32> to vector<2x8xf32>
    %cst_9 = arith.constant dense<0xFF800000> : vector<2xf32>
    %14 = vector.multi_reduction <maximumf>, %13, %cst_9 [1] : vector<2x8xf32> to vector<2xf32>
    %15 = vector.shape_cast %14 : vector<2xf32> to vector<2x1xf32>
    %16 = vector.broadcast %15 : vector<2x1xf32> to vector<2x8xf32>
    %17 = arith.subf %13, %16 : vector<2x8xf32>
    %18 = math.exp %17 : vector<2x8xf32>
    %cst_10 = arith.constant dense<0.000000e+00> : vector<2xf32>
    %19 = vector.multi_reduction <add>, %18, %cst_10 [1] : vector<2x8xf32> to vector<2xf32>
    %20 = vector.shape_cast %19 : vector<2xf32> to vector<2x1xf32>
    %21 = tpu.reciprocal %20 {approx = true} : vector<2x1xf32> -> vector<2x1xf32>
    %22 = vector.broadcast %21 : vector<2x1xf32> to vector<2x8xf32>
    %23 = arith.mulf %18, %22 : vector<2x8xf32>
    %24 = vector.shape_cast %23 : vector<2x8xf32> to vector<2x8x1xf32>
    %25 = vector.broadcast %24 : vector<2x8x1xf32> to vector<2x8x32xf32>
    %26 = arith.mulf %0, %25 : vector<2x8x32xf32>
    %c0_11 = arith.constant 0 : index
    %c0_12 = arith.constant 0 : index
    %c0_13 = arith.constant 0 : index
    %27 = vector.load %arg5[%c0_11, %c0_12, %c0_13] : memref<2x8x32xf32, #tpu.memory_space<vmem>>, vector<2x8x32xf32>
    tpu.vector_store %arg5[%c0_11, %c0_12, %c0_13], %26 {strides = array<i32>} : memref<2x8x32xf32, #tpu.memory_space<vmem>>, vector<2x8x32xf32>,
    %28 = vector.shape_cast %23 : vector<2x8xf32> to vector<2x1x8xf32>
    %c0_14 = arith.constant 0 : index
    %c0_15 = arith.constant 0 : index
    %c0_16 = arith.constant 0 : index
    %29 = vector.load %arg6[%c0_14, %c0_15, %c0_16] : memref<2x1x8xf32, #tpu.memory_space<vmem>>, vector<2x1x8xf32>
    tpu.vector_store %arg6[%c0_14, %c0_15, %c0_16], %28 {strides = array<i32>} : memref<2x1x8xf32, #tpu.memory_space<vmem>>, vector<2x1x8xf32>,
    return
  }
  func.func @transform_0(%arg0: i32) -> (i32, i32, i32) {
    %c0_i32 = arith.constant 0 : i32
    %c0_i32_0 = arith.constant 0 : i32
    %c0_i32_1 = arith.constant 0 : i32
    return %arg0, %c0_i32, %c0_i32_0 : i32, i32, i32
  }
  func.func @transform_1(%arg0: i32) -> (i32, i32) {
    %c0_i32 = arith.constant 0 : i32
    %c0_i32_0 = arith.constant 0 : i32
    %c0_i32_1 = arith.constant 0 : i32
    return %c0_i32, %c0_i32_0 : i32, i32
  }
  func.func @transform_2(%arg0: i32) -> (i32, i32) {
    %c0_i32 = arith.constant 0 : i32
    %c0_i32_0 = arith.constant 0 : i32
    %c0_i32_1 = arith.constant 0 : i32
    return %c0_i32, %c0_i32_0 : i32, i32
  }
  func.func @transform_3(%arg0: i32) -> (i32, i32) {
    %c0_i32 = arith.constant 0 : i32
    %c0_i32_0 = arith.constant 0 : i32
    %c0_i32_1 = arith.constant 0 : i32
    return %c0_i32, %c0_i32_0 : i32, i32
  }
  func.func @transform_4(%arg0: i32) -> (i32, i32, i32) {
    %c0_i32 = arith.constant 0 : i32
    %c0_i32_0 = arith.constant 0 : i32
    %c0_i32_1 = arith.constant 0 : i32
    return %arg0, %c0_i32, %c0_i32_0 : i32, i32, i32
  }
  func.func @transform_5(%arg0: i32) -> (i32, i32, i32) {
    %c0_i32 = arith.constant 0 : i32
    %c0_i32_0 = arith.constant 0 : i32
    %c0_i32_1 = arith.constant 0 : i32
    return %arg0, %c0_i32, %c0_i32_0 : i32, i32, i32
  }
}

</mosaic_0001>

<bundles_post_ra>
// kernel: tpu_custom_call.1
= control target key start
LH: loop header
LB: loop body
LE: loop exit
PB: predicated region body
PF: predicated region fallthrough
CT: control target
= control target key end

     0   :  { %11 = vsyncpa [#allocation3], 0  ;;  %s1069_s0 = inlined_call_operand.hbm [shape: f32[4,8,32], index: 0, kind: input, shape index: {}]   ;;  %s1070_s1 = inlined_call_operand.hbm [shape: f32[32,64], index: 1, kind: input, shape index: {}]   ;;  %s1071_s2 = inlined_call_operand.vmem [shape: f32[1,64], index: 2, kind: input, shape index: {}]   ;;  %s1072_s3 = inlined_call_operand.vmem [shape: f32[1,64], index: 3, kind: input, shape index: {}]   ;;  %s1073_s4 = inlined_call_operand.hbm [shape: f32[4,8,32], index: 4, kind: output, shape index: {0}]   ;;  %s1074_s5 = inlined_call_operand.hbm [shape: f32[4,1,8], index: 5, kind: output, shape index: {1}]  }
   0x1   :  { %13 = vsyncpa [#allocation3 + $0x1], 0 }
   0x2   :  { %14 = vsyncpa [#allocation6], 0 }
   0x3   :  { %15 = vsyncpa [#allocation4], 0 }
   0x4   :  { %17 = vsyncpa [#allocation4 + $0x1], 0 }
   0x5   :  { %18 = vsyncpa [#allocation9], 0 }
   0x6   :  { %20 = vsyncpa [#allocation9 + $0x1], 0  ;;  %s865_s18 = smov 0   ;;  %s867_s19 = smov 0  }
   0x7   :  { %s869_s20 = smov 0   ;;  %s871_s21 = smov 0  }
   0x8 LB: > { %s886_s22 = sadd.s32 4294967295, %s825_s21   ;;  %s552_s23 = sadd.s32 4294967294, %s825_s21   ;;  %s825_s21 = sphi %s871_s21, %s1086_s21   ;;  %s821_s20 = sphi %s869_s20, %s1085_s20   ;;  %s817_s19 = sphi %s867_s19, %s1084_s19   ;;  %s813_s18 = sphi %s865_s18, %s1083_s18  }
   0x9   : > { %p46_p0 = scmp.ne.s32.totalorder %s817_s19, %s813_s18  ;;  %p47_p1 = scmp.eq.s32.totalorder %s886_s22, 0 }
   0xa   : > { %p133_p2 = scmp.eq.s32.totalorder %s886_s22, 1  ;;  %p139_p3 = scmp.eq.s32.totalorder %s552_s23, 1 }
   0xb   : > { %p895_p4 = por %p47_p1, %p46_p0  ;;  %p553_p5 = scmp.ge.s32.totalorder %s825_s21, 1 }
   0xc   : > { %p900_p6 = por %p139_p3, %p46_p0  ;;  %p172_p7 = scmp.lt.s32.totalorder %s825_s21, 3 }
   0xd   : > { %s183_s28 = sshll.u32 %s1070_s1, 4  ;;  %s827_s30 = smov [#allocation5]   ;;  %s184_s28 = int_to_ptr.hbm [resolvable:$true] %s183_s28 }
   0xe   : > { %p908_p8 = pnand %p553_p5, %p172_p7  ;;  %s185_s6 = sshll.u32 %s827_s30, 4  ;;  %s186_s6 = int_to_ptr.vmem [resolvable:$true] %s185_s6 }
   0xf   : > { %s918_s7 = sadd.s32 1, %s825_s21   ;;  %s1075_s8 = smov 128  }
  0x10   : > { %p589_p9 = pneg %p908_p8  ;;  %s829_s9 = smov 8  }
  0x11   : > { %s30_s10 = ssub.s32 %s825_s21, %s918_s7  ;;  %s33_s11 = sadd.s32 1, %s821_s20 }
  0x12   : > { %p590_p10 = pnand %p589_p9, %p47_p1  ;;  %p31_p12 = scmp.eq.s32.totalorder %s30_s10, 0 }
  0x13   : > { %p40_p13 = scmp.ne.s32.totalorder %s821_s20, %s817_s19  ;;  %p41_p0 = scmp.eq.s32.totalorder %s825_s21, 0 }
  0x14   : > { %592 = dma.hbm_to_vmem [thread:$0]  (!%p590_p10), %s184_s28, 512, %s186_s6, [#allocation6], %s1075_s8, %s1075_s8, %s829_s9  }
  0x15   : > { %s930_s12 = scalar_select %p31_p12, %s821_s20, %s33_s11  }
  0x16   : > { %p934_p3 = por %p133_p2, %p40_p13  ;;  %p605_p5 = scmp.lt.s32.totalorder %s825_s21, 2 }
  0x17   : > { %s205_s14 = sand.u32 1, %s821_s20   ;;  %s573_s15 = sshll.u32 %s825_s21, 4 }
  0x18   : > { %p42_p7 = por %p41_p0, %p40_p13  ;;  %s556_s16 = sshll.u32 %s205_s14, 4 }
  0x19   : > { %s214_s26 = scalar_lea.hbm %s1069_s0, %s573_s15  ;;  %s209_s28 = scalar_lea.vmem [#allocation2], %s556_s16 }
  0x1a   : > { %s215_s27 = sshll.u32 %s214_s26, 4  ;;  %s217_s30 = sshll.u32 %s209_s28, 4  ;;  %s216_s27 = int_to_ptr.hbm [resolvable:$true] %s215_s27  ;;  %s218_s30 = int_to_ptr.vmem [resolvable:$true] %s217_s30 }
  0x1b   : > { %p944_p9 = pnand %p605_p5, %p42_p7  ;;  %s206_s10 = scalar_lea.sflag [#allocation3], %s205_s14 }
  0x1c   : > { %s693_s11 = sshra.s32 %s216_s27, 4  ;;  %s700_s16 = scalar_lea.hbm %s1069_s0, 32  ;;  %s694_s11 = int_to_ptr.hbm [resolvable:$true] %s693_s11 }
  0x1d   : > { %s695_s8 = scalar_lea.hbm %s694_s11, 16  ;;  %p697_p10 = pneg %p944_p9 }
  0x1e   : > { %p696_p2 = scmp.ne.s32.totalorder %s694_s11, %s695_s8  ;;  %p701_p0 = scmp.lt.s32.totalorder %s694_s11, %s1069_s0 }
  0x1f   : > { %p702_p5 = scmp.lt.s32.totalorder %s700_s16, %s695_s8 }
  0x20   : > { %p698_p12 = pnand %p697_p10, %p696_p2 }
  0x21   : > { %p703_p7 = por %p702_p5, %p701_p0 }
  0x22   : > { %p699_p13 = pneg %p698_p12 }
  0x24   : > { %p704_p11 = pnand %p703_p7, %p699_p13 }
  0x26   : > { %707 = shalt.err (!%p704_p11)
}
  0x27   : > { %s1081_s14 = smov 128   ;;  %229 = sbr.rel (%p908_p8) target bundleno = 833 (0x341), region = 36 }
  0x28   : > { %596 = dma.hbm_to_vmem [thread:$0]  (!%p944_p9), %s216_s27, 256, %s218_s30, %s206_s10, %s1081_s14, %s1081_s14, %s829_s9  }
  0x29   : > { %s964_s28 = sand.u32 (!%p908_p8), 1, %s817_s19  }
  0x2a   : > { %s560_s8 = sshll.u32 (!%p908_p8), %s964_s28, 4  ;;  %s232_s11 = scalar_lea.sflag (!%p908_p8), [#allocation3], %s964_s28 }
  0x2b   : > { %s235_s15 = scalar_lea.vmem (!%p908_p8), [#allocation2], %s560_s8 }
  0x2c   : > { %796 = dma.done.wait (%p895_p4), %s232_s11, 256  }
  0x2d   : > { %798 = vsyncadd (%p895_p4), %s232_s11, 4294967040 }
  0x2e   : > { %800 = dma.done.wait (%p47_p1), [#allocation6], 512  }
  0x2f   : > { %802 = vsyncadd (%p47_p1), [#allocation6], 4294966784  ;;  %v281_v0 = vld [vmem:[#allocation5 + $0x18] sm:$0xff]  ;;  %v280_v1 = vld [vmem:[#allocation5 + $0x10] sm:$0xff]  ;;  %vm286_vm0 = vcmask 261120   ;;  %vm324_vm1 = vcmask 523264   ;;  %v333_v19 = vlaneseq }
  0x30   : > { %305 = vmatpush.msra.mxu0 %v281_v0  ;;  %575 = vmatpush.msra.mxu1 %v281_v0  ;;  %v279_v2 = vld [vmem:[#allocation5 + $0x8] sm:$0xff]  ;;  %v278_v3 = vld [vmem:[#allocation5] sm:$0xff]  ;;  %vm337_vm2 = vcmask 1041409   ;;  %vm340_vm3 = vcmask 58368   ;;  %v830_v26 = vmov 0   ;;  %s563_s30 = sshll.u32 %s964_s28, 1 }
  0x31   : > { %v978_v4 = vld [vmem:[%s235_s15] sm:$0xff]  ;;  %v980_v5 = vld [vmem:[%s235_s15 + $0x8] sm:$0xff]  ;;  %v992_v20 = vand.u32 127, %v333_v19  ;;  %649 = vset.pattern.permute.xlu2 %v830_v26  ;;  %648 = vset.pattern.permute.xlu1 %v830_v26  ;;  %s574_s6 = sshll.u32 %s886_s22, 4  ;;  %s570_s10 = sshll.u32 %s886_s22, 1  ;;  %vm396_vm4 = vcmask 57344  }
  0x32   : > { %306 = vmatpush.msra.mxu0 %v280_v1  ;;  %576 = vmatpush.msra.mxu1 %v280_v1  ;;  %v651_v6 = vld [vmem:[%s1071_s2] ss:$0 sm:$0xff]  ;;  %s416_s23 = scalar_lea.hbm %s1073_s4, %s574_s6  ;;  %s265_s26 = scalar_lea.vmem [#allocation7], %s560_s8 }
  0x33   : > { %v652_v11 = vld [vmem:[%s1072_s3] ss:$0 sm:$0xff]  ;;  %650 = vset.pattern.permute.xlu0 %v830_v26  ;;  %s417_s14 = sshll.u32 %s265_s26, 4  ;;  %s272_s11 = scalar_lea.vmem [#allocation8], %s563_s30  ;;  %s1013_s14 = int_to_ptr.vmem [resolvable:$true] %s417_s14 }
  0x34   : > { %307 = vmatpush.msra.mxu0 %v279_v2  ;;  %577 = vmatpush.msra.mxu1 %v279_v2  ;;  %s433_s15 = sshll.u32 %s272_s11, 4  ;;  %s432_s9 = scalar_lea.hbm %s1074_s5, %s570_s10  ;;  %s1015_s15 = int_to_ptr.vmem [resolvable:$true] %s433_s15 }
  0x35   : > { %s419_s27 = sshll.u32 %s416_s23, 4  ;;  %s435_s22 = sshll.u32 %s432_s9, 4  ;;  %s420_s27 = int_to_ptr.hbm [resolvable:$true] %s419_s27  ;;  %s1022_s22 = int_to_ptr.hbm [resolvable:$true] %s435_s22 }
  0x36   : > { %308 = vmatpush.msra.mxu0 %v278_v3  ;;  %578 = vmatpush.msra.mxu1 %v278_v3  ;;  %s400_s8 = scalar_lea.sflag [#allocation4], %s964_s28  ;;  %s737_s30 = sshra.s32 %s420_s27, 4  ;;  %s738_s30 = int_to_ptr.hbm [resolvable:$true] %s737_s30 }
  0x37   : > { %564 = vmatmul.msk.f32.vlgmr.msra.gmra.mxu0 %vm286_vm0, %v978_v4  ;;  %565 = vmatmul.msk.f32.vlgmr.msra.gmra.mxu1 %vm286_vm0, %v980_v5  ;;  %s739_s6 = scalar_lea.hbm %s738_s30, 16  ;;  %s743_s16 = scalar_lea.hbm %s1073_s4, 32 }
  0x38   : > { %p740_p1 = scmp.ne.s32.totalorder %s738_s30, %s739_s6  ;;  %p744_p11 = scmp.lt.s32.totalorder %s738_s30, %s1073_s4 }
  0x39   : > { %p745_p9 = scmp.lt.s32.totalorder %s743_s16, %s739_s6 }
  0x3a   : > { %p741_p4 = pnand %p740_p1, %p934_p3 }
  0x3b   : > { %p746_p2 = por %p745_p9, %p744_p11 }
  0x3c   : > { %p742_p8 = pneg %p741_p4 }
  0x3e   : > { %p747_p10 = pnand %p746_p2, %p742_p8 }
  0xb4   : > { %v310_v7 = vpop.f32.mrf.mxu0  ;;  %v313_v8 = vpop.f32.mrf.mxu1 }
  0xb5   : > { %v311_v9 = vadd.f32 %v651_v6, %v310_v7  ;;  %v314_v10 = vadd.f32 %v651_v6, %v313_v8 }
  0xb7   : > { %653 = vtanh.f32 %v311_v9 }
  0xb8   : > { %655 = vtanh.f32 %v314_v10 }
  0xbd   : > { %v654_v12 = vpop.eup %653 }
  0xbe   : > { %v322_v13 = vmul.f32 %v654_v12, %v652_v11  ;;  %v656_v14 = vpop.eup %655 }
  0xbf   : > { %v323_v16 = vmul.f32 %v656_v14, %v652_v11 }
  0xc0   : > { %v325_v15 = vsel %vm324_vm1, %v322_v13, 0.0 }
  0xc1   : > { %326 = vadd.xlane.f32.xlu0 %v325_v15  ;;  %v328_v17 = vsel %vm324_vm1, %v323_v16, 0.0 }
  0xc9   : > { %329 = vadd.xlane.f32.xlu0 %v328_v17 }
 0x134   : > { %v327_v18 = vpop.xlane.xlu0 %326 }
 0x135   : > { %v335_v22 = vperm.slane %v327_v18, %v992_v20 }
 0x13c   : > { %v330_v21 = vpop.xlane.xlu0 %329 }
 0x13d   : > { %v336_v23 = vperm.slane %v330_v21, %v992_v20 }
 0x13f   : > { %v338_v24 = vsel %vm337_vm2, %v336_v23, %v335_v22 }
 0x140   : > { %v341_v25 = vsel %vm340_vm3, %v338_v24, -inf }
 0x141   : > { %342 = vmax.xlane.f32.xlu1 %v341_v25 }
 0x1b4   : > { %v343_v27 = vpop.xlane.xlu1 %342 }
 0x1b5   : > { %v345_v28 = vperm.slane %v343_v27, 0  ;;  %v346_v29 = vperm.slane %v343_v27, 1 }
 0x1b7   : > { %v349_v30 = vsub.f32 %v327_v18, %v345_v28  ;;  %v350_v31 = vsub.f32 %v330_v21, %v346_v29 }
 0x1b9   : > { %v351_v32 = vmul.f32 1.442695, %v349_v30  ;;  %v353_v33 = vmul.f32 1.442695, %v350_v31 }
 0x1bb   : > { %657 = vpow2.f32 %v351_v32 }
 0x1bc   : > { %659 = vpow2.f32 %v353_v33 }
 0x1c1   : > { %v658_v34 = vpop.eup %657 }
 0x1c2   : > { %v660_v35 = vpop.eup %659  ;;  %358 = vperm.xlu1 %648, %v658_v34  }
 0x1c3   : > { %361 = vperm.xlu2 %649, %v660_v35  }
 0x21d   : > { %v362_v36 = vpop.permute.xlu2 %361 }
 0x21e   : > { %v364_v38 = vperm.slane %v362_v36, %v992_v20 }
 0x234   : > { %v359_v37 = vpop.permute.xlu1 %358 }
 0x235   : > { %v363_v39 = vperm.slane %v359_v37, %v992_v20 }
 0x237   : > { %v365_v40 = vsel %vm337_vm2, %v364_v38, %v363_v39 }
 0x238   : > { %v367_v41 = vsel %vm340_vm3, %v365_v40, 0.0 }
 0x239   : > { %368 = vadd.xlane.f32.xlu2 %v367_v41 }
 0x2ac   : > { %v369_v42 = vpop.xlane.xlu2 %368 }
 0x2ad   : > { %661 = vrcp.f32 %v369_v42 }
 0x2b3   : > { %v662_v43 = vpop.eup %661 }
 0x2b4   : > { %v373_v44 = vperm.slane %v662_v43, 1  ;;  %v372_v45 = vperm.slane %v662_v43, 0 }
 0x2b6   : > { %v377_v46 = vmul.f32 %v660_v35, %v373_v44  ;;  %v376_v47 = vmul.f32 %v658_v34, %v372_v45 }
 0x2b8   : > { %385 = vperm.xlu1 %648, %v377_v46   ;;  %380 = vperm.xlu0 %650, %v376_v47  }
 0x32a   : > { %v386_v48 = vpop.permute.xlu1 %385  ;;  %v381_v49 = vpop.permute.xlu0 %380 }
 0x32b   : > { %v389_v50 = vmul.f32 %v386_v48, %v980_v5  ;;  %v393_v51 = vperm.slane %v386_v48, %v992_v20  ;;  %v388_v52 = vmul.f32 %v381_v49, %v978_v4  ;;  %v392_v53 = vperm.slane %v381_v49, %v992_v20 }
 0x32d   : > { %391 = vst.msk [vmem:[%s265_s26 + $0x8] sm:$0xff] %vm286_vm0, %v389_v50 }
 0x32e   : > { %398 = vst.msk [vmem:[%s272_s11 + $0x1] sm:$0x1] %vm396_vm4, %v393_v51 }
 0x32f   : > { %390 = vst.msk [vmem:[%s265_s26] sm:$0xff] %vm286_vm0, %v388_v52 }
 0x330   : > { %397 = vst.msk [vmem:[%s272_s11] sm:$0x1] %vm396_vm4, %v392_v53 }
 0x331   : > { %750 = shalt.err (!%p747_p10)
}
 0x332   : > { %s831_s26 = smov 128   ;;  %s832_s11 = smov 8  }
 0x333   : > { %585 = dma.vmem_to_hbm [thread:$0]  (%p934_p3), %s1013_s14, 256, %s420_s27, %s400_s8, %s831_s26, %s831_s26, %s832_s11  }
 0x334   : > { %s405_s29 = scalar_lea.sflag [#allocation9], %s964_s28  ;;  %s765_s9 = sshra.s32 %s1022_s22, 4  ;;  %s766_s9 = int_to_ptr.hbm [resolvable:$true] %s765_s9 }
 0x335   : > { %s767_s10 = scalar_lea.hbm %s766_s9, 2  ;;  %s771_s17 = scalar_lea.hbm %s1074_s5, 4 }
 0x336   : > { %p768_p12 = scmp.ne.s32.totalorder %s766_s9, %s767_s10  ;;  %p772_p5 = scmp.lt.s32.totalorder %s766_s9, %s1074_s5 }
 0x337   : > { %p773_p7 = scmp.lt.s32.totalorder %s771_s17, %s767_s10 }
 0x338   : > { %p769_p13 = pnand %p768_p12, %p934_p3 }
 0x339   : > { %p774_p1 = por %p773_p7, %p772_p5 }
 0x33a   : > { %p770_p0 = pneg %p769_p13 }
 0x33c   : > { %p775_p4 = pnand %p774_p1, %p770_p0 }
 0x33e   : > { %778 = shalt.err (!%p775_p4)
}
 0x33f   : > { %s833_s28 = smov 16   ;;  %s834_s14 = smov 1  }
 0x340   : > { %586 = dma.vmem_to_hbm [thread:$0]  (%p934_p3), %s1015_s15, 32, %s1022_s22, %s405_s29, %s833_s28, %s833_s28, %s834_s14  }
 0x341 PF: > { %s450_s27 = sand.u32 1, %s813_s18   ;;  %p1082_p8 = scmp.ge.s32.totalorder %s825_s21, 2 }
 0x342   : > { %s451_s8 = scalar_lea.sflag [#allocation4], %s450_s27 }
 0x343   : > { %p598_p11 = pnand %p1082_p8, %p900_p6 }
 0x345   : > { %p599_p9 = pneg %p598_p11 }
 0x347   : > { %804 = dma.done.wait (%p599_p9), %s451_s8, 256  }
 0x348   : > { %806 = vsyncadd (%p599_p9), %s451_s8, 4294967040  ;;  %s461_s24 = scalar_lea.sflag [#allocation9], %s450_s27 }
 0x349   : > { %808 = dma.done.wait (%p599_p9), %s461_s24, 32  }
 0x34a   : > { %810 = vsyncadd (%p599_p9), %s461_s24, 4294967264  ;;  %p23_p3 = scmp.ge.s32.totalorder %s918_s7, 4   ;;  %s1083_s18 = smov %s817_s19 }
 0x34b   : > { %s1084_s19 = smov %s821_s20  ;;  %s1085_s20 = smov %s930_s12 }
 0x34c   : > { %s1086_s21 = smov %s918_s7  ;;  %25 = sbr.rel (!%p23_p3) target bundleno = 8 (0x8), region = 102 }
 0x351   :  { %467 = vsyncpa [#allocation3], 1 }
 0x352   :  { %469 = vsyncpa [#allocation3 + $0x1], 1 }
 0x353   :  { %470 = vsyncpa [#allocation6], 1 }
 0x354   :  { %471 = vsyncpa [#allocation4], 1 }
 0x355   :  { %473 = vsyncpa [#allocation4 + $0x1], 1 }
 0x356   :  { %474 = vsyncpa [#allocation9], 1 }
 0x357   :  { %476 = vsyncpa [#allocation9 + $0x1], 1 }

</bundles_post_ra>
